<compile_context>
chip_gen: v5e
topology: v5e:2x2
jax: 0.10.0
libtpu: 0.0.40
codegen_flags: <defaults>
</compile_context>

<pallas_src>
import functools
import math

import jax
import jax.numpy as jnp
from jax.experimental import pallas as pl
from jax.experimental.pallas import tpu as pltpu


def _round_up(x, m):
    return (x + m - 1) // m * m


def _pad_to(a, shape):
    pads = [(0, s - d) for d, s in zip(a.shape, shape)]
    if all(p == (0, 0) for p in pads):
        return a
    return jnp.pad(a, pads)


def _vmem_budget_bytes():
    """Usable VMEM budget for kernel working sets, generation-aware."""
    try:
        cap = int(pltpu.get_tpu_info().vmem_capacity_bytes)
    except Exception:
        cap = 64 * 1024 * 1024  # conservative fallback: v7x-class 64 MiB
    # Leave headroom for compiler-internal scratch:
    #   v7x (64 MiB physical) -> ~48 MiB;  v5e/v6e (128 MiB) -> ~102 MiB.
    return max(32 * 1024 * 1024, min(int(cap * 0.8), cap - 16 * 1024 * 1024))


def _choose_tiles(n, vmem_budget, fout_pad, *, adj_itemsize=2, s_itemsize=2,
                  max_tm=4096, max_tk=2048):
    """Pick (tm, tk, n_pad) for the adj spmm.

    Preference: large TM (the S block is re-read once per row tile, so its
    HBM share scales as 1/grid_i), large TK (amortizes per-grid-step
    overhead), everything a multiple of 128, working set within the
    generation's VMEM budget, >=2 row tiles for megacore, and zero-padding
    waste on the N^2 adj stream kept small.
    """
    n128 = _round_up(max(n, 1), 128)
    nblk = n128 // 128

    # Row-tile candidates: divisors of n128 (zero extra padding) plus the
    # usual power-of-two tiles (allowed only if padding waste stays small).
    tm_cands = {128 * d for d in range(1, nblk + 1) if nblk % d == 0}
    tm_cands |= {256, 512, 1024, 2048, 4096}

    best = None  # (traffic, steps, tm, tk, n_pad)
    for tm in sorted(tm_cands):
        if tm > max_tm or tm > 2 * n128:
            continue
        n_pad = _round_up(n128, tm)
        if tm > 128 and n_pad * n_pad > 1.15 * n128 * n128:
            continue                       # too much wasted adj traffic
        grid_i = n_pad // tm
        if grid_i < 2 and n128 > 128:
            continue                       # keep both TensorCores busy (v7x)
        tk_best = None
        for tk in range(128, min(tm, max_tk) + 1, 128):
            if n_pad % tk:
                continue
            work = (2 * tm * tk * adj_itemsize        # adj double-buffer
                    + 2 * tk * fout_pad * s_itemsize  # S double-buffer
                    + 2 * tm * fout_pad * 4           # out block (f32 worst case)
                    + tm * fout_pad * 4               # f32 accumulator scratch
                    + 2 * fout_pad * 4)               # bias
            if work <= vmem_budget:
                tk_best = tk
        if tk_best is None:
            continue
        # Estimated HBM bytes: adj stream + per-row-tile S re-read + writeback.
        traffic = (n_pad * n_pad * adj_itemsize
                   + grid_i * n_pad * fout_pad * s_itemsize
                   + n_pad * fout_pad * 4)
        steps = grid_i * (n_pad // tk_best)
        cand = (traffic, steps, tm, tk_best, n_pad)
        if best is None or cand[:2] < best[:2]:
            best = cand
    if best is None:
        return 128, 128, n128
    return best[2], best[3], best[4]


# --------------------------------------------------------------------------
# Kernel 1: S = X @ W (row-tiled, small FIN/FOUT, bf16 output)
# --------------------------------------------------------------------------
def _xw_kernel(x_ref, w_ref, o_ref):
    o_ref[...] = jnp.dot(
        x_ref[...], w_ref[...], preferred_element_type=jnp.float32
    ).astype(o_ref.dtype)


def xw_matmul(x, w, *, n_pad, row_tile, compute_dtype, vmem_limit):
    """S = X @ W.  Returns a padded (n_pad, fout_pad) array in compute_dtype."""
    fin = max(x.shape[1], w.shape[0])
    fin_pad = _round_up(fin, 128)
    fout_pad = _round_up(w.shape[1], 128)
    assert n_pad % row_tile == 0

    x_p = _pad_to(x, (n_pad, fin_pad)).astype(compute_dtype)
    w_p = _pad_to(w, (fin_pad, fout_pad)).astype(compute_dtype)

    return pl.pallas_call(
        _xw_kernel,
        out_shape=jax.ShapeDtypeStruct((n_pad, fout_pad), compute_dtype),
        grid_spec=pltpu.PrefetchScalarGridSpec(
            num_scalar_prefetch=0,
            grid=(n_pad // row_tile,),
            in_specs=[
                pl.BlockSpec((row_tile, fin_pad), lambda i: (i, 0)),   # x rows
                pl.BlockSpec((fin_pad, fout_pad), lambda i: (0, 0)),   # W resident
            ],
            out_specs=pl.BlockSpec((row_tile, fout_pad), lambda i: (i, 0)),
        ),
        compiler_params=pltpu.CompilerParams(
            dimension_semantics=("parallel",),
            vmem_limit_bytes=vmem_limit,
        ),
    )(x_p, w_p)


# --------------------------------------------------------------------------
# Kernel 2: out = relu?( adj @ S + b )   (the dominant, HBM-bound matmul)
# --------------------------------------------------------------------------
def _adj_spmm_kernel(s_ref, adj_ref, b_ref, o_ref, *scratch, apply_relu):
    """One (row-tile i, k-tile) step of  relu?( adj @ S + b ).

    s_ref:   (TK, FOUT)  compute dtype, precomputed X @ W rows for this k tile
    adj_ref: (TM, TK)    compute dtype (streamed)
    b_ref:   (1, FOUT)   f32, resident
    o_ref:   (TM, FOUT)  output block, same block index across k (resident)
    scratch: optional f32 (TM, FOUT) accumulator — only when o_ref is not f32;
             otherwise we accumulate directly into the resident o_ref.
    """
    acc_ref = scratch[0] if scratch else o_ref
    k = pl.program_id(1)

    @pl.when(k == 0)
    def _init():
        acc_ref[...] = jnp.zeros_like(acc_ref)

    # (TM, TK) @ (TK, FOUT) -> (TM, FOUT), f32 accumulation on the MXU.
    acc_ref[...] += jnp.dot(adj_ref[...], s_ref[...],
                            preferred_element_type=jnp.float32)

    @pl.when(k == pl.num_programs(1) - 1)
    def _finalize():
        out = acc_ref[...] + b_ref[...]      # (TM,F) + (1,F), once per row tile
        if apply_relu:
            out = jnp.maximum(out, 0.0)
        o_ref[...] = out.astype(o_ref.dtype)


def adj_spmm(s, adj_pad, b, *, apply_relu, out_dtype, tm, tk, vmem_limit):
    """relu?( adj_pad @ s + b ).

    s:       (n_pad, fout_pad) compute dtype (padded rows/lanes are zero).
    adj_pad: (n_pad, n_pad) compute dtype, zero-padded beyond the real graph
             (padded columns must be zero so padded rows of s never leak into
             real output rows).
    Returns a padded (n_pad, fout_pad) array in out_dtype.
    """
    n_pad, fout_pad = s.shape
    assert adj_pad.shape == (n_pad, n_pad)
    assert n_pad % tm == 0 and n_pad % tk == 0 and fout_pad % 128 == 0

    b_p = _pad_to(b.reshape(1, -1), (1, fout_pad)).astype(jnp.float32)

    grid_i, grid_k = n_pad // tm, n_pad // tk
    adj_item = jnp.dtype(adj_pad.dtype).itemsize
    s_item = jnp.dtype(s.dtype).itemsize
    out_item = jnp.dtype(out_dtype).itemsize

    cost = pl.CostEstimate(
        flops=2 * n_pad * n_pad * fout_pad,
        transcendentals=0,
        bytes_accessed=(n_pad * n_pad * adj_item             # adj streamed once
                        + grid_i * n_pad * fout_pad * s_item  # S re-read / row tile
                        + n_pad * fout_pad * out_item         # output writeback
                        + fout_pad * 4),                      # bias
    )

    needs_scratch = jnp.dtype(out_dtype) != jnp.dtype(jnp.float32)
    scratch_shapes = ([pltpu.VMEM((tm, fout_pad), jnp.float32)]
                      if needs_scratch else [])

    kernel = functools.partial(_adj_spmm_kernel, apply_relu=apply_relu)

    return pl.pallas_call(
        kernel,
        out_shape=jax.ShapeDtypeStruct((n_pad, fout_pad), out_dtype),
        grid_spec=pltpu.PrefetchScalarGridSpec(
            num_scalar_prefetch=0,
            grid=(grid_i, grid_k),                              # reduction last
            in_specs=[
                pl.BlockSpec((tk, fout_pad), lambda i, k: (k, 0)),  # S rows (k tile)
                pl.BlockSpec((tm, tk), lambda i, k: (i, k)),        # adj tile
                pl.BlockSpec((1, fout_pad), lambda i, k: (0, 0)),   # bias resident
            ],
            out_specs=pl.BlockSpec((tm, fout_pad), lambda i, k: (i, 0)),
            scratch_shapes=scratch_shapes,
        ),
        compiler_params=pltpu.CompilerParams(
            dimension_semantics=("parallel", "arbitrary"),
            vmem_limit_bytes=vmem_limit,
        ),
        cost_estimate=cost,
    )(s, adj_pad, b_p)


# --------------------------------------------------------------------------
# Full forward
# --------------------------------------------------------------------------
def gcn_forward(x, adj, params, *, compute_dtype=jnp.bfloat16):
    """GCN.forward (eval mode): gc2( relu(gc1(x, adj)), adj )."""
    w1, b1, w2, b2 = params
    n = x.shape[0]
    assert adj.shape == (n, n)
    nclass = w2.shape[1]

    fout_pad = max(_round_up(w1.shape[1], 128), _round_up(nclass, 128))

    vmem_limit = _vmem_budget_bytes()
    adj_item = jnp.dtype(compute_dtype).itemsize
    tm, tk, n_pad = _choose_tiles(n, vmem_limit, fout_pad,
                                  adj_itemsize=adj_item, s_itemsize=adj_item)

    # Normalize / pad in f32, cast once, reuse across both layers.  Padded
    # rows/cols are zero, so padded rows of S / h can never contaminate real
    # output rows (adj's padded columns multiply them by zero).
    adj_pad = _pad_to(adj.astype(jnp.float32), (n_pad, n_pad)).astype(compute_dtype)

    # dropout -> identity (eval mode).
    s1 = xw_matmul(x, w1, n_pad=n_pad, row_tile=tm,
                   compute_dtype=compute_dtype, vmem_limit=vmem_limit)
    h = adj_spmm(s1, adj_pad, b1, apply_relu=True, out_dtype=compute_dtype,
                 tm=tm, tk=tk, vmem_limit=vmem_limit)         # bf16 intermediate

    s2 = xw_matmul(h, w2, n_pad=n_pad, row_tile=tm,
                   compute_dtype=compute_dtype, vmem_limit=vmem_limit)
    out = adj_spmm(s2, adj_pad, b2, apply_relu=False, out_dtype=jnp.float32,
                   tm=tm, tk=tk, vmem_limit=vmem_limit)
    return out[:n, :nclass]


def init_gcn_params(key, nfeat, nhid, nclass):
    """Mirrors GraphConvolution.reset_parameters: uniform(-stdv, stdv),
    stdv = 1/sqrt(out_features)."""
    k1, k2, k3, k4 = jax.random.split(key, 4)
    stdv1 = 1.0 / math.sqrt(nhid)
    stdv2 = 1.0 / math.sqrt(nclass)
    w1 = jax.random.uniform(k1, (nfeat, nhid), jnp.float32, -stdv1, stdv1)
    b1 = jax.random.uniform(k2, (nhid,), jnp.float32, -stdv1, stdv1)
    w2 = jax.random.uniform(k3, (nhid, nclass), jnp.float32, -stdv2, stdv2)
    b2 = jax.random.uniform(k4, (nclass,), jnp.float32, -stdv2, stdv2)
    return w1, b1, w2, b2


if __name__ == "__main__":
    # Small synthetic graph: N nodes with nfeat-dim features.
    N, NFEAT, NHID, NCLASS = 64, 16, 32, 8

    key = jax.random.PRNGKey(0)
    kx, ka, kp = jax.random.split(key, 3)

    x = jax.random.normal(kx, (N, NFEAT), jnp.float32)

    # Symmetric-normalized dense adjacency (typical GCN preprocessing), in f32.
    a = (jax.random.uniform(ka, (N, N)) < 0.1).astype(jnp.float32)
    a = jnp.maximum(a, a.T) + jnp.eye(N, dtype=jnp.float32)  # A + I, symmetric
    deg = jnp.sum(a, axis=1)
    d_inv_sqrt = 1.0 / jnp.sqrt(deg)
    adj = a * d_inv_sqrt[:, None] * d_inv_sqrt[None, :]

    params = init_gcn_params(kp, NFEAT, NHID, NCLASS)

    fwd = jax.jit(lambda x_, adj_: gcn_forward(x_, adj_, params))
    out = jax.block_until_ready(fwd(x, adj))

    # Pure-JAX f32 reference of the same forward (eval mode).  The kernels run
    # the MXU in bf16 (f32 accumulation) with a bf16 intermediate h, so allow
    # a bf16-level tolerance.
    w1, b1, w2, b2 = params
    h_ref = jnp.maximum(adj @ (x @ w1) + b1, 0.0)
    out_ref = adj @ (h_ref @ w2) + b2
    assert out.shape == (N, NCLASS)
    assert jnp.allclose(out, out_ref, atol=2e-2, rtol=2e-2)

    print("KERNEL_OK")
</pallas_src>

<mosaic_0001>
module attributes {stable_mosaic.version = 11 : i64} {
  func.func @_xw_kernel(%arg0: i32, %arg1: memref<128x128xbf16, #tpu.memory_space<vmem>>, %arg2: memref<128x128xbf16, #tpu.memory_space<vmem>>, %arg3: memref<128x128xbf16, #tpu.memory_space<vmem>>) attributes {dimension_semantics = [#tpu.dimension_semantics<parallel>], iteration_bounds = array<i64: 1>, scalar_prefetch = 0 : i64, scratch_operands = 0 : i64, tpu.core_type = #tpu.core_type<tc>, window_params = [{transform_indices = @transform_0, window_bounds = array<i64: 128, 128>}, {pipeline_mode = #tpu.pipeline_mode<synchronous>, transform_indices = @transform_1, window_bounds = array<i64: 128, 128>}, {transform_indices = @transform_2, window_bounds = array<i64: 128, 128>}]} {
    %c0 = arith.constant 0 : index
    %c0_0 = arith.constant 0 : index
    %0 = vector.load %arg1[%c0, %c0_0] : memref<128x128xbf16, #tpu.memory_space<vmem>>, vector<128x128xbf16>
    %c0_1 = arith.constant 0 : index
    %c0_2 = arith.constant 0 : index
    %1 = vector.load %arg2[%c0_1, %c0_2] : memref<128x128xbf16, #tpu.memory_space<vmem>>, vector<128x128xbf16>
    %cst = arith.constant dense<0.000000e+00> : vector<128x128xf32>
    %2 = tpu.matmul %0, %1, %cst {dimension_numbers = #tpu.dot_dimension_numbers<[1], [0], [0], [1], [0, 0, 1, 1], [], []>} : vector<128x128xbf16>, vector<128x128xbf16>, vector<128x128xf32> -> vector<128x128xf32>
    %3 = arith.truncf %2 : vector<128x128xf32> to vector<128x128xbf16>
    %c0_3 = arith.constant 0 : index
    %c0_4 = arith.constant 0 : index
    %4 = vector.load %arg3[%c0_3, %c0_4] : memref<128x128xbf16, #tpu.memory_space<vmem>>, vector<128x128xbf16>
    tpu.vector_store %arg3[%c0_3, %c0_4], %3 {strides = array<i32>} : memref<128x128xbf16, #tpu.memory_space<vmem>>, vector<128x128xbf16>,
    return
  }
  func.func @transform_0(%arg0: i32) -> (i32, i32) {
    %c0_i32 = arith.constant 0 : i32
    %c0_i32_0 = arith.constant 0 : i32
    return %arg0, %c0_i32 : i32, i32
  }
  func.func @transform_1(%arg0: i32) -> (i32, i32) {
    %c0_i32 = arith.constant 0 : i32
    %c0_i32_0 = arith.constant 0 : i32
    %c0_i32_1 = arith.constant 0 : i32
    return %c0_i32, %c0_i32_0 : i32, i32
  }
  func.func @transform_2(%arg0: i32) -> (i32, i32) {
    %c0_i32 = arith.constant 0 : i32
    %c0_i32_0 = arith.constant 0 : i32
    return %arg0, %c0_i32 : i32, i32
  }
}

module attributes {stable_mosaic.version = 11 : i64} {
  func.func @_adj_spmm_kernel(%arg0: i32, %arg1: i32, %arg2: memref<128x128xbf16, #tpu.memory_space<vmem>>, %arg3: memref<128x128xbf16, #tpu.memory_space<vmem>>, %arg4: memref<1x128xf32, #tpu.memory_space<vmem>>, %arg5: memref<128x128xbf16, #tpu.memory_space<vmem>>, %arg6: memref<128x128xf32, #tpu.memory_space<vmem>>) attributes {dimension_semantics = [#tpu.dimension_semantics<parallel>, #tpu.dimension_semantics<arbitrary>], iteration_bounds = array<i64: 1, 1>, scalar_prefetch = 0 : i64, scratch_operands = 1 : i64, tpu.core_type = #tpu.core_type<tc>, window_params = [{transform_indices = @transform_0, window_bounds = array<i64: 128, 128>}, {transform_indices = @transform_1, window_bounds = array<i64: 128, 128>}, {pipeline_mode = #tpu.pipeline_mode<synchronous>, transform_indices = @transform_2, window_bounds = array<i64: 1, 128>}, {transform_indices = @transform_3, window_bounds = array<i64: 128, 128>}]} {
    %c0_i32 = arith.constant 0 : i32
    %0 = arith.cmpi eq, %arg1, %c0_i32 : i32
    %1 = arith.extui %0 : i1 to i32
    %c0_i32_0 = arith.constant 0 : i32
    %2 = arith.cmpi ne, %1, %c0_i32_0 : i32
    scf.if %2 {
      %cst_10 = arith.constant 0.000000e+00 : f32
      %12 = vector.broadcast %cst_10 : f32 to vector<128x128xf32>
      %c0_11 = arith.constant 0 : index
      %c0_12 = arith.constant 0 : index
      %13 = vector.load %arg6[%c0_11, %c0_12] : memref<128x128xf32, #tpu.memory_space<vmem>>, vector<128x128xf32>
      tpu.vector_store %arg6[%c0_11, %c0_12], %12 {strides = array<i32>} : memref<128x128xf32, #tpu.memory_space<vmem>>, vector<128x128xf32>,
    } else {
    }
    %c0 = arith.constant 0 : index
    %c0_1 = arith.constant 0 : index
    %3 = vector.load %arg6[%c0, %c0_1] : memref<128x128xf32, #tpu.memory_space<vmem>>, vector<128x128xf32>
    %c0_2 = arith.constant 0 : index
    %c0_3 = arith.constant 0 : index
    %4 = vector.load %arg3[%c0_2, %c0_3] : memref<128x128xbf16, #tpu.memory_space<vmem>>, vector<128x128xbf16>
    %c0_4 = arith.constant 0 : index
    %c0_5 = arith.constant 0 : index
    %5 = vector.load %arg2[%c0_4, %c0_5] : memref<128x128xbf16, #tpu.memory_space<vmem>>, vector<128x128xbf16>
    %cst = arith.constant dense<0.000000e+00> : vector<128x128xf32>
    %6 = tpu.matmul %4, %5, %cst {dimension_numbers = #tpu.dot_dimension_numbers<[1], [0], [0], [1], [0, 0, 1, 1], [], []>} : vector<128x128xbf16>, vector<128x128xbf16>, vector<128x128xf32> -> vector<128x128xf32>
    %7 = arith.addf %3, %6 : vector<128x128xf32>
    %c0_6 = arith.constant 0 : index
    %c0_7 = arith.constant 0 : index
    %8 = vector.load %arg6[%c0_6, %c0_7] : memref<128x128xf32, #tpu.memory_space<vmem>>, vector<128x128xf32>
    tpu.vector_store %arg6[%c0_6, %c0_7], %7 {strides = array<i32>} : memref<128x128xf32, #tpu.memory_space<vmem>>, vector<128x128xf32>,
    %c0_i32_8 = arith.constant 0 : i32
    %9 = arith.cmpi eq, %arg1, %c0_i32_8 : i32
    %10 = arith.extui %9 : i1 to i32
    %c0_i32_9 = arith.constant 0 : i32
    %11 = arith.cmpi ne, %10, %c0_i32_9 : i32
    scf.if %11 {
      %c0_10 = arith.constant 0 : index
      %c0_11 = arith.constant 0 : index
      %12 = vector.load %arg6[%c0_10, %c0_11] : memref<128x128xf32, #tpu.memory_space<vmem>>, vector<128x128xf32>
      %c0_12 = arith.constant 0 : index
      %c0_13 = arith.constant 0 : index
      %13 = vector.load %arg4[%c0_12, %c0_13] : memref<1x128xf32, #tpu.memory_space<vmem>>, vector<1x128xf32>
      %14 = vector.broadcast %13 : vector<1x128xf32> to vector<128x128xf32>
      %15 = arith.addf %12, %14 : vector<128x128xf32>
      %cst_14 = arith.constant 0.000000e+00 : f32
      %16 = vector.broadcast %cst_14 : f32 to vector<128x128xf32>
      %17 = arith.maximumf %15, %16 : vector<128x128xf32>
      %18 = arith.truncf %17 : vector<128x128xf32> to vector<128x128xbf16>
      %c0_15 = arith.constant 0 : index
      %c0_16 = arith.constant 0 : index
      %19 = vector.load %arg5[%c0_15, %c0_16] : memref<128x128xbf16, #tpu.memory_space<vmem>>, vector<128x128xbf16>
      tpu.vector_store %arg5[%c0_15, %c0_16], %18 {strides = array<i32>} : memref<128x128xbf16, #tpu.memory_space<vmem>>, vector<128x128xbf16>,
    } else {
    }
    return
  }
  func.func @transform_0(%arg0: i32, %arg1: i32) -> (i32, i32) {
    %c0_i32 = arith.constant 0 : i32
    %c0_i32_0 = arith.constant 0 : i32
    return %arg1, %c0_i32 : i32, i32
  }
  func.func @transform_1(%arg0: i32, %arg1: i32) -> (i32, i32) {
    %c0_i32 = arith.constant 0 : i32
    return %arg0, %arg1 : i32, i32
  }
  func.func @transform_2(%arg0: i32, %arg1: i32) -> (i32, i32) {
    %c0_i32 = arith.constant 0 : i32
    %c0_i32_0 = arith.constant 0 : i32
    %c0_i32_1 = arith.constant 0 : i32
    return %c0_i32, %c0_i32_0 : i32, i32
  }
  func.func @transform_3(%arg0: i32, %arg1: i32) -> (i32, i32) {
    %c0_i32 = arith.constant 0 : i32
    %c0_i32_0 = arith.constant 0 : i32
    return %arg0, %c0_i32 : i32, i32
  }
}

module attributes {stable_mosaic.version = 11 : i64} {
  func.func @_adj_spmm_kernel(%arg0: i32, %arg1: i32, %arg2: memref<128x128xbf16, #tpu.memory_space<vmem>>, %arg3: memref<128x128xbf16, #tpu.memory_space<vmem>>, %arg4: memref<1x128xf32, #tpu.memory_space<vmem>>, %arg5: memref<128x128xf32, #tpu.memory_space<vmem>>) attributes {dimension_semantics = [#tpu.dimension_semantics<parallel>, #tpu.dimension_semantics<arbitrary>], iteration_bounds = array<i64: 1, 1>, scalar_prefetch = 0 : i64, scratch_operands = 0 : i64, tpu.core_type = #tpu.core_type<tc>, window_params = [{transform_indices = @transform_0, window_bounds = array<i64: 128, 128>}, {transform_indices = @transform_1, window_bounds = array<i64: 128, 128>}, {pipeline_mode = #tpu.pipeline_mode<synchronous>, transform_indices = @transform_2, window_bounds = array<i64: 1, 128>}, {transform_indices = @transform_3, window_bounds = array<i64: 128, 128>}]} {
    %c0_i32 = arith.constant 0 : i32
    %0 = arith.cmpi eq, %arg1, %c0_i32 : i32
    %1 = arith.extui %0 : i1 to i32
    %c0_i32_0 = arith.constant 0 : i32
    %2 = arith.cmpi ne, %1, %c0_i32_0 : i32
    scf.if %2 {
      %cst_10 = arith.constant 0.000000e+00 : f32
      %12 = vector.broadcast %cst_10 : f32 to vector<128x128xf32>
      %c0_11 = arith.constant 0 : index
      %c0_12 = arith.constant 0 : index
      %13 = vector.load %arg5[%c0_11, %c0_12] : memref<128x128xf32, #tpu.memory_space<vmem>>, vector<128x128xf32>
      tpu.vector_store %arg5[%c0_11, %c0_12], %12 {strides = array<i32>} : memref<128x128xf32, #tpu.memory_space<vmem>>, vector<128x128xf32>,
    } else {
    }
    %c0 = arith.constant 0 : index
    %c0_1 = arith.constant 0 : index
    %3 = vector.load %arg5[%c0, %c0_1] : memref<128x128xf32, #tpu.memory_space<vmem>>, vector<128x128xf32>
    %c0_2 = arith.constant 0 : index
    %c0_3 = arith.constant 0 : index
    %4 = vector.load %arg3[%c0_2, %c0_3] : memref<128x128xbf16, #tpu.memory_space<vmem>>, vector<128x128xbf16>
    %c0_4 = arith.constant 0 : index
    %c0_5 = arith.constant 0 : index
    %5 = vector.load %arg2[%c0_4, %c0_5] : memref<128x128xbf16, #tpu.memory_space<vmem>>, vector<128x128xbf16>
    %cst = arith.constant dense<0.000000e+00> : vector<128x128xf32>
    %6 = tpu.matmul %4, %5, %cst {dimension_numbers = #tpu.dot_dimension_numbers<[1], [0], [0], [1], [0, 0, 1, 1], [], []>} : vector<128x128xbf16>, vector<128x128xbf16>, vector<128x128xf32> -> vector<128x128xf32>
    %7 = arith.addf %3, %6 : vector<128x128xf32>
    %c0_6 = arith.constant 0 : index
    %c0_7 = arith.constant 0 : index
    %8 = vector.load %arg5[%c0_6, %c0_7] : memref<128x128xf32, #tpu.memory_space<vmem>>, vector<128x128xf32>
    tpu.vector_store %arg5[%c0_6, %c0_7], %7 {strides = array<i32>} : memref<128x128xf32, #tpu.memory_space<vmem>>, vector<128x128xf32>,
    %c0_i32_8 = arith.constant 0 : i32
    %9 = arith.cmpi eq, %arg1, %c0_i32_8 : i32
    %10 = arith.extui %9 : i1 to i32
    %c0_i32_9 = arith.constant 0 : i32
    %11 = arith.cmpi ne, %10, %c0_i32_9 : i32
    scf.if %11 {
      %c0_10 = arith.constant 0 : index
      %c0_11 = arith.constant 0 : index
      %12 = vector.load %arg5[%c0_10, %c0_11] : memref<128x128xf32, #tpu.memory_space<vmem>>, vector<128x128xf32>
      %c0_12 = arith.constant 0 : index
      %c0_13 = arith.constant 0 : index
      %13 = vector.load %arg4[%c0_12, %c0_13] : memref<1x128xf32, #tpu.memory_space<vmem>>, vector<1x128xf32>
      %14 = vector.broadcast %13 : vector<1x128xf32> to vector<128x128xf32>
      %15 = arith.addf %12, %14 : vector<128x128xf32>
      %c0_14 = arith.constant 0 : index
      %c0_15 = arith.constant 0 : index
      %16 = vector.load %arg5[%c0_14, %c0_15] : memref<128x128xf32, #tpu.memory_space<vmem>>, vector<128x128xf32>
      tpu.vector_store %arg5[%c0_14, %c0_15], %15 {strides = array<i32>} : memref<128x128xf32, #tpu.memory_space<vmem>>, vector<128x128xf32>,
    } else {
    }
    return
  }
  func.func @transform_0(%arg0: i32, %arg1: i32) -> (i32, i32) {
    %c0_i32 = arith.constant 0 : i32
    %c0_i32_0 = arith.constant 0 : i32
    return %arg1, %c0_i32 : i32, i32
  }
  func.func @transform_1(%arg0: i32, %arg1: i32) -> (i32, i32) {
    %c0_i32 = arith.constant 0 : i32
    return %arg0, %arg1 : i32, i32
  }
  func.func @transform_2(%arg0: i32, %arg1: i32) -> (i32, i32) {
    %c0_i32 = arith.constant 0 : i32
    %c0_i32_0 = arith.constant 0 : i32
    %c0_i32_1 = arith.constant 0 : i32
    return %c0_i32, %c0_i32_0 : i32, i32
  }
  func.func @transform_3(%arg0: i32, %arg1: i32) -> (i32, i32) {
    %c0_i32 = arith.constant 0 : i32
    %c0_i32_0 = arith.constant 0 : i32
    return %arg0, %c0_i32 : i32, i32
  }
}

</mosaic_0001>

<bundles_post_ra>
// kernel: _lambda_.4
= control target key start
LH: loop header
LB: loop body
LE: loop exit
PB: predicated region body
PF: predicated region fallthrough
CT: control target
= control target key end

     0   :  { %s462_s1 = inlined_call_operand.vmem [shape: bf16[128,128], index: 1, kind: input, shape index: {}]   ;;  %s463_s0 = inlined_call_operand.vmem [shape: bf16[128,128], index: 0, kind: input, shape index: {}]   ;;  %s464_s2 = inlined_call_operand.vmem [shape: bf16[128,128], index: 2, kind: output, shape index: {}]  }
   0x1   :  { %v303_v0 = vld [vmem:[%s462_s1 + $0x38] sm:$0xff]  ;;  %v302_v1 = vld [vmem:[%s462_s1 + $0x30] sm:$0xff]  ;;  %v301_v2 = vld [vmem:[%s462_s1 + $0x28] sm:$0xff] }
   0x2   :  { %139 = vmatpush.bf16.msra.mxu0 %v303_v0  ;;  %351 = vmatpush.bf16.msra.mxu1 %v303_v0  ;;  %v300_v3 = vld [vmem:[%s462_s1 + $0x20] sm:$0xff]  ;;  %v299_v4 = vld [vmem:[%s462_s1 + $0x18] sm:$0xff]  ;;  %v298_v5 = vld [vmem:[%s462_s1 + $0x10] sm:$0xff] }
   0x3   :  { %352 = vmatpush.bf16.msra.mxu2 %v303_v0  ;;  %353 = vmatpush.bf16.msra.mxu3 %v303_v0  ;;  %v297_v6 = vld [vmem:[%s462_s1 + $0x8] sm:$0xff]  ;;  %v296_v7 = vld [vmem:[%s462_s1] sm:$0xff]  ;;  %v290_v9 = vld [vmem:[%s463_s0 + $0x10] sm:$0xff] }
   0x4   :  { %v288_v8 = vld [vmem:[%s463_s0] sm:$0xff]  ;;  %v294_v11 = vld [vmem:[%s463_s0 + $0x30] sm:$0xff]  ;;  %v289_v12 = vld [vmem:[%s463_s0 + $0x8] sm:$0xff] }
   0x5   :  { %v292_v10 = vld [vmem:[%s463_s0 + $0x20] sm:$0xff]  ;;  %v291_v13 = vld [vmem:[%s463_s0 + $0x18] sm:$0xff]  ;;  %v293_v14 = vld [vmem:[%s463_s0 + $0x28] sm:$0xff] }
   0x6   :  { %140 = vmatpush.bf16.msra.mxu0 %v302_v1  ;;  %354 = vmatpush.bf16.msra.mxu1 %v302_v1  ;;  %v295_v15 = vld [vmem:[%s463_s0 + $0x38] sm:$0xff] }
   0x7   :  { %355 = vmatpush.bf16.msra.mxu2 %v302_v1  ;;  %356 = vmatpush.bf16.msra.mxu3 %v302_v1 }
   0xa   :  { %141 = vmatpush.bf16.msra.mxu0 %v301_v2  ;;  %357 = vmatpush.bf16.msra.mxu1 %v301_v2 }
   0xb   :  { %358 = vmatpush.bf16.msra.mxu2 %v301_v2  ;;  %359 = vmatpush.bf16.msra.mxu3 %v301_v2 }
   0xe   :  { %142 = vmatpush.bf16.msra.mxu0 %v300_v3  ;;  %360 = vmatpush.bf16.msra.mxu1 %v300_v3 }
   0xf   :  { %361 = vmatpush.bf16.msra.mxu2 %v300_v3  ;;  %362 = vmatpush.bf16.msra.mxu3 %v300_v3 }
  0x12   :  { %143 = vmatpush.bf16.msra.mxu0 %v299_v4  ;;  %363 = vmatpush.bf16.msra.mxu1 %v299_v4 }
  0x13   :  { %364 = vmatpush.bf16.msra.mxu2 %v299_v4  ;;  %365 = vmatpush.bf16.msra.mxu3 %v299_v4 }
  0x16   :  { %144 = vmatpush.bf16.msra.mxu0 %v298_v5  ;;  %366 = vmatpush.bf16.msra.mxu1 %v298_v5 }
  0x17   :  { %367 = vmatpush.bf16.msra.mxu2 %v298_v5  ;;  %368 = vmatpush.bf16.msra.mxu3 %v298_v5 }
  0x1a   :  { %145 = vmatpush.bf16.msra.mxu0 %v297_v6  ;;  %369 = vmatpush.bf16.msra.mxu1 %v297_v6 }
  0x1b   :  { %370 = vmatpush.bf16.msra.mxu2 %v297_v6  ;;  %371 = vmatpush.bf16.msra.mxu3 %v297_v6 }
  0x1e   :  { %146 = vmatpush.bf16.msra.mxu0 %v296_v7  ;;  %372 = vmatpush.bf16.msra.mxu1 %v296_v7 }
  0x1f   :  { %373 = vmatpush.bf16.msra.mxu2 %v296_v7  ;;  %374 = vmatpush.bf16.msra.mxu3 %v296_v7 }
  0x21   :  { %147 = vmatmul.bf16.vlgmr.msra.gmra.mxu0 %v288_v8  ;;  %157 = vmatmul.bf16.vlgmr.msra.gmra.mxu1 %v290_v9 }
  0x22   :  { %167 = vmatmul.bf16.vlgmr.msra.gmra.mxu2 %v292_v10  ;;  %177 = vmatmul.bf16.vlgmr.msra.gmra.mxu3 %v294_v11 }
  0x31   :  { %152 = vmatmul.bf16.gmra.mxu0 %v289_v12  ;;  %162 = vmatmul.bf16.gmra.mxu1 %v291_v13 }
  0x32   :  { %172 = vmatmul.bf16.gmra.mxu2 %v293_v14  ;;  %182 = vmatmul.bf16.gmra.mxu3 %v295_v15 }
  0x9e   :  { %v148_v16 = vpop.f32.mrf.mxu0  ;;  %v158_v17 = vpop.f32.mrf.mxu1 }
  0xa5   :  { %v168_v18 = vpop.f32.mrf.mxu2  ;;  %v178_v19 = vpop.f32.mrf.mxu3 }
  0xa6   :  { %v150_v20 = vpop.f32.mrf.mxu0  ;;  %v160_v21 = vpop.f32.mrf.mxu1 }
  0xa7   :  { %v307_v22 = vpack.c.bf16 %v150_v20, %v148_v16  ;;  %v317_v23 = vpack.c.bf16 %v160_v21, %v158_v17 }
  0xa9   :  { %308 = vst [vmem:[%s464_s2] sm:$0xff] %v307_v22  }
  0xaa   :  { %345 = vst [vmem:[%s464_s2 + $0x10] sm:$0xff] %v317_v23  }
  0xad   :  { %v170_v24 = vpop.f32.mrf.mxu2  ;;  %v180_v25 = vpop.f32.mrf.mxu3 }
  0xae   :  { %v327_v26 = vpack.c.bf16 %v170_v24, %v168_v18  ;;  %v337_v27 = vpack.c.bf16 %v180_v25, %v178_v19  ;;  %v153_v28 = vpop.f32.mrf.mxu0  ;;  %v163_v29 = vpop.f32.mrf.mxu1 }
  0xb0   :  { %347 = vst [vmem:[%s464_s2 + $0x20] sm:$0xff] %v327_v26  }
  0xb1   :  { %349 = vst [vmem:[%s464_s2 + $0x30] sm:$0xff] %v337_v27  }
  0xb5   :  { %v173_v30 = vpop.f32.mrf.mxu2  ;;  %v183_v31 = vpop.f32.mrf.mxu3 }
  0xb6   :  { %v155_v32 = vpop.f32.mrf.mxu0  ;;  %v165_v33 = vpop.f32.mrf.mxu1 }
  0xb7   :  { %v312_v34 = vpack.c.bf16 %v155_v32, %v153_v28  ;;  %v322_v35 = vpack.c.bf16 %v165_v33, %v163_v29 }
  0xb9   :  { %344 = vst [vmem:[%s464_s2 + $0x8] sm:$0xff] %v312_v34  }
  0xba   :  { %346 = vst [vmem:[%s464_s2 + $0x18] sm:$0xff] %v322_v35  }
  0xbd   :  { %v175_v36 = vpop.f32.mrf.mxu2  ;;  %v185_v37 = vpop.f32.mrf.mxu3 }
  0xbe   :  { %v332_v38 = vpack.c.bf16 %v175_v36, %v173_v30  ;;  %v342_v39 = vpack.c.bf16 %v185_v37, %v183_v31 }
  0xc0   :  { %348 = vst [vmem:[%s464_s2 + $0x28] sm:$0xff] %v332_v38  }
  0xc1   :  { %350 = vst [vmem:[%s464_s2 + $0x38] sm:$0xff] %v342_v39  }

// kernel: _lambda_.7
= control target key start
LH: loop header
LB: loop body
LE: loop exit
PB: predicated region body
PF: predicated region fallthrough
CT: control target
= control target key end

     0   :  { %s543_s0 = inlined_call_operand.vmem [shape: bf16[128,128], index: 0, kind: input, shape index: {}]   ;;  %s544_s2 = inlined_call_operand.vmem [shape: f32[1,128], index: 2, kind: input, shape index: {}]   ;;  %s545_s1 = inlined_call_operand.vmem [shape: bf16[128,128], index: 1, kind: input, shape index: {}]   ;;  %s546_s3 = inlined_call_operand.vmem [shape: f32[128,128], index: 3, kind: output, shape index: {}]  }
   0x1   :  { %v397_v0 = vld [vmem:[%s543_s0 + $0x38] sm:$0xff]  ;;  %v396_v1 = vld [vmem:[%s543_s0 + $0x30] sm:$0xff]  ;;  %v395_v2 = vld [vmem:[%s543_s0 + $0x28] sm:$0xff] }
   0x2   :  { %178 = vmatpush.bf16.msra.mxu0 %v397_v0  ;;  %398 = vmatpush.bf16.msra.mxu1 %v397_v0  ;;  %v394_v3 = vld [vmem:[%s543_s0 + $0x20] sm:$0xff]  ;;  %v393_v4 = vld [vmem:[%s543_s0 + $0x18] sm:$0xff]  ;;  %v392_v5 = vld [vmem:[%s543_s0 + $0x10] sm:$0xff] }
   0x3   :  { %399 = vmatpush.bf16.msra.mxu2 %v397_v0  ;;  %400 = vmatpush.bf16.msra.mxu3 %v397_v0  ;;  %v391_v6 = vld [vmem:[%s543_s0 + $0x8] sm:$0xff]  ;;  %v390_v7 = vld [vmem:[%s543_s0] sm:$0xff]  ;;  %v384_v9 = vld [vmem:[%s545_s1 + $0x10] sm:$0xff] }
   0x4   :  { %v382_v8 = vld [vmem:[%s545_s1] sm:$0xff]  ;;  %v388_v11 = vld [vmem:[%s545_s1 + $0x30] sm:$0xff]  ;;  %v383_v12 = vld [vmem:[%s545_s1 + $0x8] sm:$0xff] }
   0x5   :  { %v386_v10 = vld [vmem:[%s545_s1 + $0x20] sm:$0xff]  ;;  %v385_v13 = vld [vmem:[%s545_s1 + $0x18] sm:$0xff]  ;;  %v387_v14 = vld [vmem:[%s545_s1 + $0x28] sm:$0xff] }
   0x6   :  { %179 = vmatpush.bf16.msra.mxu0 %v396_v1  ;;  %401 = vmatpush.bf16.msra.mxu1 %v396_v1  ;;  %v389_v15 = vld [vmem:[%s545_s1 + $0x38] sm:$0xff]  ;;  %v423_v16 = vld [vmem:[%s544_s2] ss:$0 sm:$0xff] }
   0x7   :  { %402 = vmatpush.bf16.msra.mxu2 %v396_v1  ;;  %403 = vmatpush.bf16.msra.mxu3 %v396_v1 }
   0xa   :  { %180 = vmatpush.bf16.msra.mxu0 %v395_v2  ;;  %404 = vmatpush.bf16.msra.mxu1 %v395_v2 }
   0xb   :  { %405 = vmatpush.bf16.msra.mxu2 %v395_v2  ;;  %406 = vmatpush.bf16.msra.mxu3 %v395_v2 }
   0xe   :  { %181 = vmatpush.bf16.msra.mxu0 %v394_v3  ;;  %407 = vmatpush.bf16.msra.mxu1 %v394_v3 }
   0xf   :  { %408 = vmatpush.bf16.msra.mxu2 %v394_v3  ;;  %409 = vmatpush.bf16.msra.mxu3 %v394_v3 }
  0x12   :  { %182 = vmatpush.bf16.msra.mxu0 %v393_v4  ;;  %410 = vmatpush.bf16.msra.mxu1 %v393_v4 }
  0x13   :  { %411 = vmatpush.bf16.msra.mxu2 %v393_v4  ;;  %412 = vmatpush.bf16.msra.mxu3 %v393_v4 }
  0x16   :  { %183 = vmatpush.bf16.msra.mxu0 %v392_v5  ;;  %413 = vmatpush.bf16.msra.mxu1 %v392_v5 }
  0x17   :  { %414 = vmatpush.bf16.msra.mxu2 %v392_v5  ;;  %415 = vmatpush.bf16.msra.mxu3 %v392_v5 }
  0x1a   :  { %184 = vmatpush.bf16.msra.mxu0 %v391_v6  ;;  %416 = vmatpush.bf16.msra.mxu1 %v391_v6 }
  0x1b   :  { %417 = vmatpush.bf16.msra.mxu2 %v391_v6  ;;  %418 = vmatpush.bf16.msra.mxu3 %v391_v6 }
  0x1e   :  { %185 = vmatpush.bf16.msra.mxu0 %v390_v7  ;;  %419 = vmatpush.bf16.msra.mxu1 %v390_v7 }
  0x1f   :  { %420 = vmatpush.bf16.msra.mxu2 %v390_v7  ;;  %421 = vmatpush.bf16.msra.mxu3 %v390_v7 }
  0x21   :  { %186 = vmatmul.bf16.vlgmr.msra.gmra.mxu0 %v382_v8  ;;  %196 = vmatmul.bf16.vlgmr.msra.gmra.mxu1 %v384_v9 }
  0x22   :  { %206 = vmatmul.bf16.vlgmr.msra.gmra.mxu2 %v386_v10  ;;  %216 = vmatmul.bf16.vlgmr.msra.gmra.mxu3 %v388_v11 }
  0x31   :  { %191 = vmatmul.bf16.gmra.mxu0 %v383_v12  ;;  %201 = vmatmul.bf16.gmra.mxu1 %v385_v13 }
  0x32   :  { %211 = vmatmul.bf16.gmra.mxu2 %v387_v14  ;;  %221 = vmatmul.bf16.gmra.mxu3 %v389_v15 }
  0x9e   :  { %v187_v17 = vpop.f32.mrf.mxu0  ;;  %v197_v18 = vpop.f32.mrf.mxu1 }
  0x9f   :  { %v282_v19 = vadd.f32 %v423_v16, %v187_v17  ;;  %v286_v20 = vadd.f32 %v423_v16, %v197_v18 }
  0xa1   :  { %298 = vst [vmem:[%s546_s3] sm:$0xff] %v282_v19 }
  0xa2   :  { %302 = vst [vmem:[%s546_s3 + $0x20] sm:$0xff] %v286_v20 }
  0xa5   :  { %v207_v21 = vpop.f32.mrf.mxu2  ;;  %v217_v22 = vpop.f32.mrf.mxu3 }
  0xa6   :  { %v189_v23 = vpop.f32.mrf.mxu0  ;;  %v199_v24 = vpop.f32.mrf.mxu1  ;;  %v290_v25 = vadd.f32 %v423_v16, %v207_v21  ;;  %v294_v26 = vadd.f32 %v423_v16, %v217_v22 }
  0xa7   :  { %v283_v27 = vadd.f32 %v423_v16, %v189_v23  ;;  %v287_v28 = vadd.f32 %v423_v16, %v199_v24 }
  0xa8   :  { %306 = vst [vmem:[%s546_s3 + $0x40] sm:$0xff] %v290_v25 }
  0xa9   :  { %310 = vst [vmem:[%s546_s3 + $0x60] sm:$0xff] %v294_v26 }
  0xaa   :  { %299 = vst [vmem:[%s546_s3 + $0x8] sm:$0xff] %v283_v27 }
  0xab   :  { %303 = vst [vmem:[%s546_s3 + $0x28] sm:$0xff] %v287_v28 }
  0xad   :  { %v209_v29 = vpop.f32.mrf.mxu2  ;;  %v219_v30 = vpop.f32.mrf.mxu3 }
  0xae   :  { %v192_v31 = vpop.f32.mrf.mxu0  ;;  %v202_v32 = vpop.f32.mrf.mxu1  ;;  %v291_v33 = vadd.f32 %v423_v16, %v209_v29  ;;  %v295_v34 = vadd.f32 %v423_v16, %v219_v30 }
  0xaf   :  { %v284_v35 = vadd.f32 %v423_v16, %v192_v31  ;;  %v288_v36 = vadd.f32 %v423_v16, %v202_v32 }
  0xb0   :  { %307 = vst [vmem:[%s546_s3 + $0x48] sm:$0xff] %v291_v33 }
  0xb1   :  { %311 = vst [vmem:[%s546_s3 + $0x68] sm:$0xff] %v295_v34 }
  0xb2   :  { %300 = vst [vmem:[%s546_s3 + $0x10] sm:$0xff] %v284_v35 }
  0xb3   :  { %304 = vst [vmem:[%s546_s3 + $0x30] sm:$0xff] %v288_v36 }
  0xb5   :  { %v212_v37 = vpop.f32.mrf.mxu2  ;;  %v222_v38 = vpop.f32.mrf.mxu3 }
  0xb6   :  { %v194_v39 = vpop.f32.mrf.mxu0  ;;  %v204_v40 = vpop.f32.mrf.mxu1  ;;  %v292_v41 = vadd.f32 %v423_v16, %v212_v37  ;;  %v296_v42 = vadd.f32 %v423_v16, %v222_v38 }
  0xb7   :  { %v285_v43 = vadd.f32 %v423_v16, %v194_v39  ;;  %v289_v44 = vadd.f32 %v423_v16, %v204_v40 }
  0xb8   :  { %308 = vst [vmem:[%s546_s3 + $0x50] sm:$0xff] %v292_v41 }
  0xb9   :  { %312 = vst [vmem:[%s546_s3 + $0x70] sm:$0xff] %v296_v42 }
  0xba   :  { %301 = vst [vmem:[%s546_s3 + $0x18] sm:$0xff] %v285_v43 }
  0xbb   :  { %305 = vst [vmem:[%s546_s3 + $0x38] sm:$0xff] %v289_v44 }
  0xbd   :  { %v214_v45 = vpop.f32.mrf.mxu2  ;;  %v224_v46 = vpop.f32.mrf.mxu3 }
  0xbe   :  { %v293_v47 = vadd.f32 %v423_v16, %v214_v45  ;;  %v297_v48 = vadd.f32 %v423_v16, %v224_v46 }
  0xc0   :  { %309 = vst [vmem:[%s546_s3 + $0x58] sm:$0xff] %v293_v47 }
  0xc1   :  { %313 = vst [vmem:[%s546_s3 + $0x78] sm:$0xff] %v297_v48 }

// kernel: _lambda_.5
= control target key start
LH: loop header
LB: loop body
LE: loop exit
PB: predicated region body
PF: predicated region fallthrough
CT: control target
= control target key end

     0   :  { %s597_s0 = inlined_call_operand.vmem [shape: bf16[128,128], index: 0, kind: input, shape index: {}]   ;;  %s598_s2 = inlined_call_operand.vmem [shape: f32[1,128], index: 2, kind: input, shape index: {}]   ;;  %s599_s1 = inlined_call_operand.vmem [shape: bf16[128,128], index: 1, kind: input, shape index: {}]   ;;  %s600_s3 = inlined_call_operand.vmem [shape: bf16[128,128], index: 3, kind: output, shape index: {}]  }
   0x1   :  { %v429_v0 = vld [vmem:[%s597_s0 + $0x38] sm:$0xff]  ;;  %v428_v1 = vld [vmem:[%s597_s0 + $0x30] sm:$0xff]  ;;  %v427_v2 = vld [vmem:[%s597_s0 + $0x28] sm:$0xff] }
   0x2   :  { %178 = vmatpush.bf16.msra.mxu0 %v429_v0  ;;  %477 = vmatpush.bf16.msra.mxu1 %v429_v0  ;;  %v426_v3 = vld [vmem:[%s597_s0 + $0x20] sm:$0xff]  ;;  %v425_v4 = vld [vmem:[%s597_s0 + $0x18] sm:$0xff]  ;;  %v424_v5 = vld [vmem:[%s597_s0 + $0x10] sm:$0xff] }
   0x3   :  { %478 = vmatpush.bf16.msra.mxu2 %v429_v0  ;;  %479 = vmatpush.bf16.msra.mxu3 %v429_v0  ;;  %v423_v6 = vld [vmem:[%s597_s0 + $0x8] sm:$0xff]  ;;  %v422_v7 = vld [vmem:[%s597_s0] sm:$0xff]  ;;  %v416_v9 = vld [vmem:[%s599_s1 + $0x10] sm:$0xff] }
   0x4   :  { %v414_v8 = vld [vmem:[%s599_s1] sm:$0xff]  ;;  %v420_v11 = vld [vmem:[%s599_s1 + $0x30] sm:$0xff]  ;;  %v415_v12 = vld [vmem:[%s599_s1 + $0x8] sm:$0xff] }
   0x5   :  { %v418_v10 = vld [vmem:[%s599_s1 + $0x20] sm:$0xff]  ;;  %v417_v13 = vld [vmem:[%s599_s1 + $0x18] sm:$0xff]  ;;  %v419_v14 = vld [vmem:[%s599_s1 + $0x28] sm:$0xff] }
   0x6   :  { %179 = vmatpush.bf16.msra.mxu0 %v428_v1  ;;  %480 = vmatpush.bf16.msra.mxu1 %v428_v1  ;;  %v421_v15 = vld [vmem:[%s599_s1 + $0x38] sm:$0xff]  ;;  %v501_v18 = vld [vmem:[%s598_s2] ss:$0 sm:$0xff] }
   0x7   :  { %481 = vmatpush.bf16.msra.mxu2 %v428_v1  ;;  %482 = vmatpush.bf16.msra.mxu3 %v428_v1 }
   0xa   :  { %180 = vmatpush.bf16.msra.mxu0 %v427_v2  ;;  %483 = vmatpush.bf16.msra.mxu1 %v427_v2 }
   0xb   :  { %484 = vmatpush.bf16.msra.mxu2 %v427_v2  ;;  %485 = vmatpush.bf16.msra.mxu3 %v427_v2 }
   0xe   :  { %181 = vmatpush.bf16.msra.mxu0 %v426_v3  ;;  %486 = vmatpush.bf16.msra.mxu1 %v426_v3 }
   0xf   :  { %487 = vmatpush.bf16.msra.mxu2 %v426_v3  ;;  %488 = vmatpush.bf16.msra.mxu3 %v426_v3 }
  0x12   :  { %182 = vmatpush.bf16.msra.mxu0 %v425_v4  ;;  %489 = vmatpush.bf16.msra.mxu1 %v425_v4 }
  0x13   :  { %490 = vmatpush.bf16.msra.mxu2 %v425_v4  ;;  %491 = vmatpush.bf16.msra.mxu3 %v425_v4 }
  0x16   :  { %183 = vmatpush.bf16.msra.mxu0 %v424_v5  ;;  %492 = vmatpush.bf16.msra.mxu1 %v424_v5 }
  0x17   :  { %493 = vmatpush.bf16.msra.mxu2 %v424_v5  ;;  %494 = vmatpush.bf16.msra.mxu3 %v424_v5 }
  0x1a   :  { %184 = vmatpush.bf16.msra.mxu0 %v423_v6  ;;  %495 = vmatpush.bf16.msra.mxu1 %v423_v6 }
  0x1b   :  { %496 = vmatpush.bf16.msra.mxu2 %v423_v6  ;;  %497 = vmatpush.bf16.msra.mxu3 %v423_v6 }
  0x1e   :  { %185 = vmatpush.bf16.msra.mxu0 %v422_v7  ;;  %498 = vmatpush.bf16.msra.mxu1 %v422_v7 }
  0x1f   :  { %499 = vmatpush.bf16.msra.mxu2 %v422_v7  ;;  %500 = vmatpush.bf16.msra.mxu3 %v422_v7 }
  0x21   :  { %186 = vmatmul.bf16.vlgmr.msra.gmra.mxu0 %v414_v8  ;;  %196 = vmatmul.bf16.vlgmr.msra.gmra.mxu1 %v416_v9 }
  0x22   :  { %206 = vmatmul.bf16.vlgmr.msra.gmra.mxu2 %v418_v10  ;;  %216 = vmatmul.bf16.vlgmr.msra.gmra.mxu3 %v420_v11 }
  0x31   :  { %191 = vmatmul.bf16.gmra.mxu0 %v415_v12  ;;  %201 = vmatmul.bf16.gmra.mxu1 %v417_v13 }
  0x32   :  { %211 = vmatmul.bf16.gmra.mxu2 %v419_v14  ;;  %221 = vmatmul.bf16.gmra.mxu3 %v421_v15 }
  0x9e   :  { %v187_v16 = vpop.f32.mrf.mxu0  ;;  %v197_v17 = vpop.f32.mrf.mxu1 }
  0x9f   :  { %v282_v19 = vadd.f32 %v501_v18, %v187_v16  ;;  %v286_v20 = vadd.f32 %v501_v18, %v197_v17 }
  0xa1   :  { %v298_v27 = vmax.f32 %v282_v19, 0.0  ;;  %v302_v28 = vmax.f32 %v286_v20, 0.0 }
  0xa5   :  { %v207_v21 = vpop.f32.mrf.mxu2  ;;  %v217_v22 = vpop.f32.mrf.mxu3 }
  0xa6   :  { %v189_v23 = vpop.f32.mrf.mxu0  ;;  %v199_v24 = vpop.f32.mrf.mxu1  ;;  %v290_v33 = vadd.f32 %v501_v18, %v207_v21  ;;  %v294_v34 = vadd.f32 %v501_v18, %v217_v22 }
  0xa7   :  { %v283_v25 = vadd.f32 %v501_v18, %v189_v23  ;;  %v287_v26 = vadd.f32 %v501_v18, %v199_v24 }
  0xa8   :  { %v306_v41 = vmax.f32 %v290_v33, 0.0  ;;  %v310_v42 = vmax.f32 %v294_v34, 0.0 }
  0xa9   :  { %v299_v29 = vmax.f32 %v283_v25, 0.0  ;;  %v303_v30 = vmax.f32 %v287_v26, 0.0 }
  0xab   :  { %v433_v31 = vpack.c.bf16 %v299_v29, %v298_v27  ;;  %v443_v32 = vpack.c.bf16 %v303_v30, %v302_v28 }
  0xad   :  { %434 = vst [vmem:[%s600_s3] sm:$0xff] %v433_v31   ;;  %v209_v35 = vpop.f32.mrf.mxu2  ;;  %v219_v36 = vpop.f32.mrf.mxu3 }
  0xae   :  { %471 = vst [vmem:[%s600_s3 + $0x10] sm:$0xff] %v443_v32   ;;  %v291_v37 = vadd.f32 %v501_v18, %v209_v35  ;;  %v295_v38 = vadd.f32 %v501_v18, %v219_v36  ;;  %v192_v39 = vpop.f32.mrf.mxu0  ;;  %v202_v40 = vpop.f32.mrf.mxu1 }
  0xaf   :  { %v284_v47 = vadd.f32 %v501_v18, %v192_v39  ;;  %v288_v48 = vadd.f32 %v501_v18, %v202_v40 }
  0xb0   :  { %v307_v43 = vmax.f32 %v291_v37, 0.0  ;;  %v311_v44 = vmax.f32 %v295_v38, 0.0 }
  0xb1   :  { %v300_v55 = vmax.f32 %v284_v47, 0.0  ;;  %v304_v56 = vmax.f32 %v288_v48, 0.0 }
  0xb2   :  { %v453_v45 = vpack.c.bf16 %v307_v43, %v306_v41  ;;  %v463_v46 = vpack.c.bf16 %v311_v44, %v310_v42 }
  0xb4   :  { %473 = vst [vmem:[%s600_s3 + $0x20] sm:$0xff] %v453_v45  }
  0xb5   :  { %475 = vst [vmem:[%s600_s3 + $0x30] sm:$0xff] %v463_v46   ;;  %v212_v49 = vpop.f32.mrf.mxu2  ;;  %v222_v50 = vpop.f32.mrf.mxu3 }
  0xb6   :  { %v194_v51 = vpop.f32.mrf.mxu0  ;;  %v204_v52 = vpop.f32.mrf.mxu1  ;;  %v292_v61 = vadd.f32 %v501_v18, %v212_v49  ;;  %v296_v62 = vadd.f32 %v501_v18, %v222_v50 }
  0xb7   :  { %v285_v53 = vadd.f32 %v501_v18, %v194_v51  ;;  %v289_v54 = vadd.f32 %v501_v18, %v204_v52 }
  0xb8   :  { %v308_v3 = vmax.f32 %v292_v61, 0.0  ;;  %v312_v4 = vmax.f32 %v296_v62, 0.0 }
  0xb9   :  { %v301_v57 = vmax.f32 %v285_v53, 0.0  ;;  %v305_v58 = vmax.f32 %v289_v54, 0.0 }
  0xbb   :  { %v438_v59 = vpack.c.bf16 %v301_v57, %v300_v55  ;;  %v448_v60 = vpack.c.bf16 %v305_v58, %v304_v56 }
  0xbd   :  { %470 = vst [vmem:[%s600_s3 + $0x8] sm:$0xff] %v438_v59   ;;  %v214_v63 = vpop.f32.mrf.mxu2  ;;  %v224_v0 = vpop.f32.mrf.mxu3 }
  0xbe   :  { %472 = vst [vmem:[%s600_s3 + $0x18] sm:$0xff] %v448_v60   ;;  %v293_v1 = vadd.f32 %v501_v18, %v214_v63  ;;  %v297_v2 = vadd.f32 %v501_v18, %v224_v0 }
  0xc0   :  { %v309_v5 = vmax.f32 %v293_v1, 0.0  ;;  %v313_v6 = vmax.f32 %v297_v2, 0.0 }
  0xc2   :  { %v458_v7 = vpack.c.bf16 %v309_v5, %v308_v3  ;;  %v468_v8 = vpack.c.bf16 %v313_v6, %v312_v4 }
  0xc4   :  { %474 = vst [vmem:[%s600_s3 + $0x28] sm:$0xff] %v458_v7  }
  0xc5   :  { %476 = vst [vmem:[%s600_s3 + $0x38] sm:$0xff] %v468_v8  }

</bundles_post_ra>
